<compile_context>
chip_gen: v5e
topology: v5e:2x2
jax: 0.10.0
libtpu: 0.0.40
codegen_flags: <defaults>
</compile_context>

<pallas_src>
import math
from typing import List, Tuple

import jax
import jax.numpy as jnp
from jax.experimental import pallas as pl
from jax.experimental.pallas import tpu as pltpu


_LANE = 128          # lane width: last-dim tiles must be multiples of 128
_NEG_SLOPE = 0.3     # matches F.leaky_relu_(., 0.3)


def _round_up(x: int, m: int) -> int:
    return ((x + m - 1) // m) * m


def _grouped_project_kernel(tile_type_ref, x_ref, w_ref, b_ref, o_ref):
    # tile_type_ref: SMEM [num_tiles] int32  (consumed only by the index_maps)
    # x_ref: [TM, D_pad]   w_ref: [1, D_pad, C_pad]   b_ref: [1, 1, C_pad]
    # o_ref: [TM, C_pad]
    del tile_type_ref
    y = jnp.dot(x_ref[...], w_ref[0], preferred_element_type=jnp.float32)
    y = y + b_ref[0]
    o_ref[...] = jnp.where(y >= 0.0, y, jnp.float32(_NEG_SLOPE) * y)


def _grouped_project(tile_type, x_all, w_all, b_all, *, tile_rows):
    """leaky_relu(x @ W_t + b_t, 0.3) for all row tiles in one pallas_call."""
    n_rows, d_pad = x_all.shape
    _, _, c_pad = w_all.shape
    num_tiles = n_rows // tile_rows

    grid_spec = pltpu.PrefetchScalarGridSpec(
        num_scalar_prefetch=1,
        grid=(num_tiles,),
        in_specs=[
            # X row tile: streamed / double-buffered over the grid.
            pl.BlockSpec((tile_rows, d_pad), lambda i, tt: (i, 0)),
            # Per-type weight slab, selected by the prefetched tile->type map.
            pl.BlockSpec((1, d_pad, c_pad), lambda i, tt: (tt[i], 0, 0)),
            # Per-type bias; block index repeats for same-type tiles -> no re-DMA.
            pl.BlockSpec((1, 1, c_pad), lambda i, tt: (tt[i], 0, 0)),
        ],
        out_specs=pl.BlockSpec((tile_rows, c_pad), lambda i, tt: (i, 0)),
    )

    return pl.pallas_call(
        _grouped_project_kernel,
        out_shape=jax.ShapeDtypeStruct((n_rows, c_pad), jnp.float32),
        grid_spec=grid_spec,
        compiler_params=pltpu.CompilerParams(
            # Row tiles are independent -> megacore sharding on v7x.
            dimension_semantics=("parallel",),
        ),
    )(tile_type, x_all, w_all, b_all)


class Node2CommonSpace:
    """JAX/Pallas port of the PyTorch Node2CommonSpace module."""

    def __init__(self, common_space: int, node_type_info: List[Tuple[str, int]],
                 key, *, tile_rows: int = 256, compute_dtype=jnp.float32):
        self.common_space = common_space
        self.node_type_info = node_type_info
        self.tile_rows = int(tile_rows)           # multiple of 8 (f32 sublane)
        self.compute_dtype = compute_dtype        # f32 (bf16 on v6e/v7x is a ~2x mem win)
        self.type_index = {name: t for t, (name, _) in enumerate(node_type_info)}
        self.type_dims = dict(node_type_info)

        self.c_pad = _round_up(common_space, _LANE)
        self.d_pad = _round_up(max(d for _, d in node_type_info), _LANE)

        self.node_matrices = {}
        w_slabs, b_slabs = [], []
        for node_, node_dim in node_type_info:
            key, kw, kb = jax.random.split(key, 3)
            # kaiming_uniform_(a=sqrt(5)) on [C, node_dim] -> bound = 1/sqrt(fan_in)
            bound = 1.0 / math.sqrt(node_dim)
            w = jax.random.uniform(kw, (common_space, node_dim), jnp.float32,
                                   minval=-bound, maxval=bound)
            b = jax.random.uniform(kb, (common_space,), jnp.float32,
                                   minval=-bound, maxval=bound)
            self.node_matrices[node_] = w
            self.node_matrices[node_ + "_bias"] = b

            # Pre-transpose once to [d, C] and zero-pad to lane-aligned slabs.
            w_dc = jnp.zeros((self.d_pad, self.c_pad), jnp.float32)
            w_dc = w_dc.at[:node_dim, :common_space].set(w.T)
            b_pad = jnp.zeros((1, self.c_pad), jnp.float32)
            b_pad = b_pad.at[0, :common_space].set(b)
            w_slabs.append(w_dc)
            b_slabs.append(b_pad)

        # Stacked per-type weights/biases consumed by the grouped kernel.
        self.w_all = jnp.stack(w_slabs, axis=0).astype(compute_dtype)  # [T, D_pad, C_pad]
        self.b_all = jnp.stack(b_slabs, axis=0)                        # [T, 1, C_pad] f32

    # --- PyTorch-API parity helpers -------------------------------------
    def get_node_type_matrix(self, node_type: str):
        return self.node_matrices[node_type]

    def get_matrix(self, node_type: str):
        return self.node_matrices[node_type]

    def get_common_space(self) -> int:
        return self.common_space

    def get_common_node_space(self, node):
        return self.forward([node.get_node_features()], [node.get_node_type()])

    # --- forward ---------------------------------------------------------
    def forward(self, node_matrix: List[jnp.ndarray], node_types: List[str]):
        num_nodes = len(node_types)
        tm = self.tile_rows

        # Host-side grouping by type (node_types is a Python list -> static).
        by_type = {}
        for idx, t in enumerate(node_types):
            by_type.setdefault(t, []).append(idx)

        x_blocks = []
        tile_type_ids = []
        perm = [0] * num_nodes          # perm[orig_idx] -> row in packed layout
        row = 0
        for type_, idxs in by_type.items():
            d = self.type_dims[type_]
            feats = []
            for i in idxs:
                # Each node contributes one feature row (matches the torch
                # per-node squeeze() semantics).
                f = jnp.asarray(node_matrix[i], jnp.float32).reshape(-1)
                feats.append(f)
                perm[i] = row
                row += 1
            x_t = jnp.stack(feats, axis=0)                 # [n_t, d_t]
            n_t = x_t.shape[0]
            n_pad = _round_up(n_t, tm)
            x_t = jnp.pad(x_t, ((0, n_pad - n_t), (0, self.d_pad - d)))
            row += n_pad - n_t
            x_blocks.append(x_t)
            tile_type_ids += [self.type_index[type_]] * (n_pad // tm)

        x_all = jnp.concatenate(x_blocks, axis=0).astype(self.compute_dtype)
        tile_type = jnp.asarray(tile_type_ids, jnp.int32)

        out_pad = _grouped_project(tile_type, x_all, self.w_all, self.b_all,
                                   tile_rows=tm)           # [rows_pad, C_pad]

        # Restore original node order and drop the lane padding.
        perm = jnp.asarray(perm, jnp.int32)
        return out_pad[perm, : self.common_space]


def _reference_forward(model: Node2CommonSpace, node_matrix, node_types):
    """Plain-JAX reference matching the PyTorch semantics."""
    outs = []
    for idx, type_ in enumerate(node_types):
        w = model.node_matrices[type_]
        b = model.node_matrices[type_ + "_bias"]
        f = jnp.asarray(node_matrix[idx], jnp.float32).reshape(1, -1)
        y = (f @ w.T + b[None, :]).squeeze()
        outs.append(jnp.where(y >= 0, y, _NEG_SLOPE * y))
    return jnp.stack(outs, axis=0)


if __name__ == "__main__":
    key = jax.random.PRNGKey(0)
    key, kmodel = jax.random.split(key)

    common_space = 32
    node_type_info = [("paper", 16), ("author", 24)]
    model = Node2CommonSpace(common_space, node_type_info, kmodel)

    node_types = ["paper", "author", "paper", "author", "paper", "author"]
    dims = dict(node_type_info)
    node_matrix = []
    for t in node_types:
        key, kf = jax.random.split(key)
        node_matrix.append(jax.random.normal(kf, (dims[t],), jnp.float32))

    out = model.forward(node_matrix, node_types)
    out = jax.block_until_ready(out)

    ref = _reference_forward(model, node_matrix, node_types)
    assert out.shape == (len(node_types), common_space)
    assert jnp.allclose(out, ref, atol=1e-5, rtol=1e-5), "mismatch vs reference"

    print("KERNEL_OK")
</pallas_src>

<mosaic_0001>
module attributes {stable_mosaic.version = 11 : i64} {
  func.func @_grouped_project_kernel(%arg0: i32, %arg1: memref<2xi32, #tpu.memory_space<smem>>, %arg2: memref<256x128xf32, #tpu.memory_space<vmem>>, %arg3: memref<1x128x128xf32, #tpu.memory_space<vmem>>, %arg4: memref<1x1x128xf32, #tpu.memory_space<vmem>>, %arg5: memref<256x128xf32, #tpu.memory_space<vmem>>) attributes {dimension_semantics = [#tpu.dimension_semantics<parallel>], iteration_bounds = array<i64: 2>, scalar_prefetch = 1 : i64, scratch_operands = 0 : i64, tpu.core_type = #tpu.core_type<tc>, window_params = [{transform_indices = @transform_0, window_bounds = array<i64: 256, 128>}, {transform_indices = @transform_1, window_bounds = array<i64: 1, 128, 128>}, {transform_indices = @transform_2, window_bounds = array<i64: 1, 1, 128>}, {transform_indices = @transform_3, window_bounds = array<i64: 256, 128>}]} {
    %c0 = arith.constant 0 : index
    %c0_0 = arith.constant 0 : index
    %0 = vector.load %arg2[%c0, %c0_0] : memref<256x128xf32, #tpu.memory_space<vmem>>, vector<256x128xf32>
    %c0_1 = arith.constant 0 : index
    %c0_2 = arith.constant 0 : index
    %c0_3 = arith.constant 0 : index
    %1 = vector.load %arg3[%c0_1, %c0_2, %c0_3] : memref<1x128x128xf32, #tpu.memory_space<vmem>>, vector<1x128x128xf32>
    %2 = vector.shape_cast %1 : vector<1x128x128xf32> to vector<128x128xf32>
    %cst = arith.constant dense<0.000000e+00> : vector<256x128xf32>
    %3 = tpu.matmul %0, %2, %cst {dimension_numbers = #tpu.dot_dimension_numbers<[1], [0], [0], [1], [0, 0, 1, 1], [], []>} : vector<256x128xf32>, vector<128x128xf32>, vector<256x128xf32> -> vector<256x128xf32>
    %c0_4 = arith.constant 0 : index
    %c0_5 = arith.constant 0 : index
    %c0_6 = arith.constant 0 : index
    %4 = vector.load %arg4[%c0_4, %c0_5, %c0_6] : memref<1x1x128xf32, #tpu.memory_space<vmem>>, vector<1x1x128xf32>
    %5 = vector.shape_cast %4 : vector<1x1x128xf32> to vector<1x128xf32>
    %6 = vector.broadcast %5 : vector<1x128xf32> to vector<256x128xf32>
    %7 = arith.addf %3, %6 : vector<256x128xf32>
    %cst_7 = arith.constant 0.000000e+00 : f32
    %8 = vector.broadcast %cst_7 : f32 to vector<256x128xf32>
    %9 = arith.cmpf oge, %7, %8 : vector<256x128xf32>
    %cst_8 = arith.constant 3.000000e-01 : f32
    %10 = vector.broadcast %cst_8 : f32 to vector<256x128xf32>
    %11 = arith.mulf %10, %7 : vector<256x128xf32>
    %12 = arith.select %9, %7, %11 : vector<256x128xi1>, vector<256x128xf32>
    %c0_9 = arith.constant 0 : index
    %c0_10 = arith.constant 0 : index
    %13 = vector.load %arg5[%c0_9, %c0_10] : memref<256x128xf32, #tpu.memory_space<vmem>>, vector<256x128xf32>
    tpu.vector_store %arg5[%c0_9, %c0_10], %12 {strides = array<i32>} : memref<256x128xf32, #tpu.memory_space<vmem>>, vector<256x128xf32>,
    return
  }
  func.func @transform_0(%arg0: i32, %arg1: memref<2xi32, #tpu.memory_space<smem>>) -> (i32, i32) {
    %c0_i32 = arith.constant 0 : i32
    %c0_i32_0 = arith.constant 0 : i32
    return %arg0, %c0_i32 : i32, i32
  }
  func.func @transform_1(%arg0: i32, %arg1: memref<2xi32, #tpu.memory_space<smem>>) -> (i32, i32, i32) {
    %0 = arith.index_cast %arg0 : i32 to index
    %1 = memref.load %arg1[%0] : memref<2xi32, #tpu.memory_space<smem>>
    %c0_i32 = arith.constant 0 : i32
    %c0_i32_0 = arith.constant 0 : i32
    %c0_i32_1 = arith.constant 0 : i32
    return %1, %c0_i32, %c0_i32_0 : i32, i32, i32
  }
  func.func @transform_2(%arg0: i32, %arg1: memref<2xi32, #tpu.memory_space<smem>>) -> (i32, i32, i32) {
    %0 = arith.index_cast %arg0 : i32 to index
    %1 = memref.load %arg1[%0] : memref<2xi32, #tpu.memory_space<smem>>
    %c0_i32 = arith.constant 0 : i32
    %c0_i32_0 = arith.constant 0 : i32
    %c0_i32_1 = arith.constant 0 : i32
    return %1, %c0_i32, %c0_i32_0 : i32, i32, i32
  }
  func.func @transform_3(%arg0: i32, %arg1: memref<2xi32, #tpu.memory_space<smem>>) -> (i32, i32) {
    %c0_i32 = arith.constant 0 : i32
    %c0_i32_0 = arith.constant 0 : i32
    return %arg0, %c0_i32 : i32, i32
  }
}

</mosaic_0001>

<bundles_post_ra>
// kernel: tpu_custom_call.1
= control target key start
LH: loop header
LB: loop body
LE: loop exit
PB: predicated region body
PF: predicated region fallthrough
CT: control target
= control target key end

     0   :  { %s1007_s18 = smov [#allocation3]   ;;  %s1395_s0 = inlined_call_operand.hbm [shape: s32[2], index: 0, kind: input, shape index: {}]   ;;  %s1396_s1 = inlined_call_operand.hbm [shape: f32[512,128], index: 1, kind: input, shape index: {}]   ;;  %s1397_s2 = inlined_call_operand.hbm [shape: f32[2,128,128], index: 2, kind: input, shape index: {}]   ;;  %s1398_s3 = inlined_call_operand.vmem [shape: f32[2,1,128], index: 3, kind: input, shape index: {}]   ;;  %s1399_s4 = inlined_call_operand.hbm [shape: f32[512,128], index: 4, kind: output, shape index: {}]  }
   0x1   :  { %1405 = sst [smem:[#allocation19_spill]] %s1396_s1  ;;  %s10_s17 = sshll.u32 %s1395_s0, 4  ;;  %s11_s17 = int_to_ptr.hbm [resolvable:$true] %s10_s17 }
   0x2   :  { %13 = dma.hbm_to_smem %s11_s17, 16, %s1007_s18, [#allocation2] }
   0x3   :  { %965 = dma.done.wait [#allocation2], 16 }
   0x4   :  { %966 = vsyncadd [#allocation2], 4294967280 }
   0x5   :  { %16 = sfence }
   0x6   :  { %17 = vsyncpa [#allocation5], 0 }
   0x7   :  { %19 = vsyncpa [#allocation5 + $0x1], 0 }
   0x8   :  { %20 = vsyncpa [#allocation8], 0 }
   0x9   :  { %22 = vsyncpa [#allocation8 + $0x1], 0 }
   0xa   :  { %23 = vsyncpa [#allocation6], 0 }
   0xb   :  { %25 = vsyncpa [#allocation6 + $0x1], 0  ;;  %s1040_s19 = smov 0   ;;  %s1042_s20 = smov 0  }
   0xc   :  { %s1044_s21 = smov 0   ;;  %s1046_s22 = smov 0  }
   0xd   :  { %s1048_s0 = smov 0   ;;  %s1050_s23 = smov 0  }
   0xe   :  { %s1052_s24 = smov 0  }
   0xf LB: > { %1406 = sst [smem:[#allocation16_spill]] %s1001_s23  ;;  %s1076_s25 = sadd.s32 4294967295, %s1005_s24   ;;  %s1005_s24 = sphi %s1052_s24, %s1433_s24   ;;  %s1001_s23 = sphi %s1050_s23, %s1427_s23   ;;  %s997_s0 = sphi %s1048_s0, %s1432_s0   ;;  %s993_s22 = sphi %s1046_s22, %s1431_s22   ;;  %s989_s21 = sphi %s1044_s21, %s1430_s21   ;;  %s985_s20 = sphi %s1042_s20, %s1429_s20   ;;  %s981_s19 = sphi %s1040_s19, %s1428_s19  }
  0x10   : > { %s683_s26 = sadd.s32 4294967294, %s1005_s24   ;;  %s1080_s27 = sadd.s32 1, %s1005_s24  }
  0x11   : > { %s38_s28 = sadd.s32 1, %s1001_s23  ;;  %s35_s29 = ssub.s32 %s1005_s24, %s1080_s27 }
  0x12   : > { %p45_p0 = scmp.ne.s32.totalorder %s1001_s23, %s997_s0  ;;  %p36_p1 = scmp.eq.s32.totalorder %s35_s29, 0 }
  0x13   : > { %p1401_p2 = scmp.eq.s32.totalorder %s1005_s24, 0  ;;  %p51_p3 = scmp.ne.s32.totalorder %s997_s0, %s993_s22 }
  0x14   : > { %p52_p4 = scmp.eq.s32.totalorder %s1076_s25, 0  ;;  %s1107_s7 = sld [smem:[#allocation3 + %s1080_s27]] }
  0x15   : > { %s1092_s30 = scalar_select %p36_p1, %s1001_s23, %s38_s28  }
  0x16   : > { %p1096_p5 = por %p1401_p2, %p45_p0  ;;  %p1102_p6 = por %p52_p4, %p51_p3 }
  0x17   : > { %1407 = sst [smem:[#allocation17_spill]] %s1092_s30  ;;  %p131_p7 = scmp.eq.s32.totalorder %s1076_s25, 1 }
  0x18   : > { %p137_p8 = scmp.eq.s32.totalorder %s683_s26, 1  ;;  %p1400_p11 = scmp.lt.s32.totalorder %s1005_s24, 2 }
  0x19   : > { %p1111_p10 = por %p131_p7, %p45_p0  ;;  %s157_s10 = sand.u32 1, %s1001_s23  }
  0x1a   : > { %p1116_p12 = por %p137_p8, %p51_p3  ;;  %s686_s11 = sshll.u32 %s157_s10, 8 }
  0x1b   : > { %s701_s12 = sshll.u32 %s1005_s24, 8  ;;  %s1412_s1 = sld [smem:[#allocation19_spill]] }
  0x1c   : > { %s161_s16 = scalar_lea.vmem [#allocation4], %s686_s11  ;;  %p1129_p13 = pnand %p1400_p11, %p1096_p5 }
  0x1d   : > { %s169_s17 = sshll.u32 %s161_s16, 4  ;;  %p692_p0 = scmp.ge.s32.totalorder %s1005_s24, 1  ;;  %s170_s17 = int_to_ptr.vmem [resolvable:$true] %s169_s17 }
  0x1e   : > { %s158_s28 = scalar_lea.sflag [#allocation5], %s157_s10  ;;  %p853_p3 = pneg %p1129_p13 }
  0x21   : > { %s166_s15 = scalar_lea.hbm %s1412_s1, %s701_s12  ;;  %s856_s5 = scalar_lea.hbm %s1412_s1, 512 }
  0x22   : > { %s167_s18 = sshll.u32 %s166_s15, 4  ;;  %s168_s18 = int_to_ptr.hbm [resolvable:$true] %s167_s18 }
  0x23   : > { %s849_s29 = sshra.s32 %s168_s18, 4  ;;  %s850_s29 = int_to_ptr.hbm [resolvable:$true] %s849_s29 }
  0x24   : > { %s851_s30 = scalar_lea.hbm %s850_s29, 256  ;;  %p857_p5 = scmp.lt.s32.totalorder %s850_s29, %s1412_s1 }
  0x25   : > { %p852_p1 = scmp.ne.s32.totalorder %s850_s29, %s851_s30  ;;  %p858_p9 = scmp.lt.s32.totalorder %s856_s5, %s851_s30 }
  0x27   : > { %p854_p7 = pnand %p853_p3, %p852_p1  ;;  %p859_p11 = por %p858_p9, %p857_p5 }
  0x29   : > { %p855_p8 = pneg %p854_p7 }
  0x2b   : > { %p860_p2 = pnand %p859_p11, %p855_p8 }
  0x2d   : > { %863 = shalt.err (!%p860_p2)
}
  0x2e   : > { %s1402_s10 = smov 128   ;;  %s1403_s15 = smov 8  }
  0x2f   : > { %763 = dma.hbm_to_vmem [thread:$0]  (!%p1129_p13), %s168_s18, 4096, %s170_s17, %s158_s28, %s1402_s10, %s1402_s10, %s1403_s15  }
  0x30   : > { %p208_p2 = scmp.lt.s32.totalorder %s1005_s24, 3  ;;  %s61_s16 = sld [smem:[#allocation3 + %s1005_s24]] }
  0x31   : > { %p73_p11 = scmp.ne.s32.totalorder %s989_s21, %s985_s20  ;;  %p79_p1 = scmp.ne.s32.totalorder %s985_s20, %s981_s19 }
  0x32   : > { %p1150_p9 = pnand %p692_p0, %p208_p2  ;;  %s179_s29 = sand.u32 1, %s989_s21  }
  0x33   : > { %p1161_p3 = por %p79_p1, %p52_p4  ;;  %p1416_p7 = scmp.eq.s32.totalorder %s1005_s24, 0 }
  0x34   : > { %s66_s17 = sadd.s32 1, %s989_s21  ;;  %s689_s28 = sshll.u32 %s179_s29, 7 }
  0x35   : > { %p75_p13 = por %p73_p11, %p1416_p7  ;;  %p1417_p0 = scmp.lt.s32.totalorder %s1005_s24, 2 }
  0x36   : > { %s63_s18 = ssub.s32 %s61_s16, %s1107_s7  ;;  %s183_s14 = scalar_lea.vmem [#allocation7], %s689_s28 }
  0x37   : > { %p64_p8 = scmp.eq.s32.totalorder %s63_s18, 0  ;;  %p1172_p5 = pnand %p1417_p0, %p75_p13 }
  0x38   : > { %s753_s12 = scalar_select %p75_p13, [#allocation3], [#allocation10] }
  0x39   : > { %s1177_s5 = scalar_select %p64_p8, %s989_s21, %s66_s17  }
  0x3a   : > { %s754_s19 = scalar_select %p75_p13, %s1005_s24, 0 }
  0x3b   : > { %1419 = sst [smem:[#allocation18_spill]] %s1177_s5  ;;  %p1420_p4 = pmov %p1417_p0 }
  0x3c   : > { %p1421_p2 = pmov %p1417_p0  ;;  %s192_s10 = sshll.u32 %s183_s14, 4  ;;  %s193_s10 = int_to_ptr.vmem [resolvable:$true] %s192_s10 }
  0x3d   : > { %s1435_s12 = smov (!%p1420_p4, %s753_s12), [#allocation11]  ;;  %s180_s23 = scalar_lea.sflag [#allocation8], %s179_s29 }
  0x3e   : > { %s1437_s19 = smov (!%p1421_p2, %s754_s19), 0  ;;  %p883_p1 = pneg %p1172_p5 }
  0x3f   : > { %s184_s13 = sld [smem:[%s1435_s12 + %s1437_s19]]  ;;  %s886_s19 = scalar_lea.hbm %s1397_s2, 256 }
  0x45   : > { %s702_s7 = sshll.u32 %s184_s13, 7 }
  0x46   : > { %s189_s15 = scalar_lea.hbm %s1397_s2, %s702_s7 }
  0x47   : > { %s190_s1 = sshll.u32 %s189_s15, 4  ;;  %s191_s1 = int_to_ptr.hbm [resolvable:$true] %s190_s1 }
  0x48   : > { %s879_s17 = sshra.s32 %s191_s1, 4  ;;  %s880_s17 = int_to_ptr.hbm [resolvable:$true] %s879_s17 }
  0x49   : > { %s881_s5 = scalar_lea.hbm %s880_s17, 128  ;;  %p887_p8 = scmp.lt.s32.totalorder %s880_s17, %s1397_s2 }
  0x4a   : > { %p882_p11 = scmp.ne.s32.totalorder %s880_s17, %s881_s5  ;;  %p888_p0 = scmp.lt.s32.totalorder %s886_s19, %s881_s5 }
  0x4c   : > { %p884_p7 = pnand %p883_p1, %p882_p11  ;;  %p889_p4 = por %p888_p0, %p887_p8 }
  0x4e   : > { %p885_p13 = pneg %p884_p7 }
  0x50   : > { %p890_p2 = pnand %p889_p4, %p885_p13 }
  0x52   : > { %893 = shalt.err (!%p890_p2)
}
  0x53   : > { %s1422_s15 = smov 8   ;;  %s1423_s29 = smov 128  }
  0x54   : > { %768 = dma.hbm_to_vmem [thread:$0]  (!%p1172_p5), %s191_s1, 2048, %s193_s10, %s180_s23, %s1423_s29, %s1423_s29, %s1422_s15  }
  0x55   : > { %212 = sbr.rel (%p1150_p9) target bundleno = 325 (0x145), region = 32  ;;  %s1203_s7 = sand.u32 (!%p1150_p9), 1, %s997_s0  }
  0x56   : > { %s693_s5 = sshll.u32 (!%p1150_p9), %s1203_s7, 8  ;;  %s215_s16 = scalar_lea.sflag (!%p1150_p9), [#allocation5], %s1203_s7 }
  0x57   : > { %s1209_s18 = scalar_lea.vmem (!%p1150_p9), [#allocation4], %s693_s5 }
  0x5a   : > { %968 = dma.done.wait (%p1102_p6), %s215_s16, 4096  }
  0x5b   : > { %970 = vsyncadd (%p1102_p6), %s215_s16, 4294963200  ;;  %s224_s1 = sand.u32 1, %s985_s20  }
  0x5c   : > { %s694_s23 = sshll.u32 %s224_s1, 7  ;;  %s225_s10 = scalar_lea.sflag [#allocation8], %s224_s1 }
  0x5d   : > { %s1216_s30 = scalar_lea.vmem [#allocation7], %s694_s23 }
  0x5e   : > { %972 = dma.done.wait (%p1161_p3), %s225_s10, 2048  }
  0x5f   : > { %974 = vsyncadd (%p1161_p3), %s225_s10, 4294965248  ;;  %s263_s11 = sld [smem:[#allocation3 + %s1076_s25]]  ;;  %v316_v0 = vld [vmem:[%s1216_s30 + $0x78] sm:$0xff]  ;;  %v315_v1 = vld [vmem:[%s1216_s30 + $0x70] sm:$0xff]  ;;  %s1290_s19 = scalar_lea.vmem [#allocation9], %s693_s5 }
  0x60   : > { %705 = vmatpush.msra.mxu2 %v316_v0  ;;  %706 = vmatpush.msra.mxu3 %v316_v0  ;;  %v314_v2 = vld [vmem:[%s1216_s30 + $0x68] sm:$0xff]  ;;  %v313_v3 = vld [vmem:[%s1216_s30 + $0x60] sm:$0xff]  ;;  %v312_v4 = vld [vmem:[%s1216_s30 + $0x58] sm:$0xff]  ;;  %s703_s13 = sshll.u32 %s1076_s25, 8  ;;  %s575_s25 = sshll.u32 %s1290_s19, 4  ;;  %s576_s25 = int_to_ptr.vmem [resolvable:$true] %s575_s25 }
  0x61   : > { %321 = vmatpush.msra.mxu0 %v316_v0  ;;  %704 = vmatpush.msra.mxu1 %v316_v0  ;;  %v311_v5 = vld [vmem:[%s1216_s30 + $0x50] sm:$0xff]  ;;  %v310_v6 = vld [vmem:[%s1216_s30 + $0x48] sm:$0xff]  ;;  %v309_v7 = vld [vmem:[%s1216_s30 + $0x40] sm:$0xff]  ;;  %s574_s29 = scalar_lea.hbm %s1399_s4, %s703_s13  ;;  %s563_s16 = scalar_lea.sflag [#allocation6], %s1203_s7 }
  0x62   : > { %708 = vmatpush.msra.mxu2 %v315_v1  ;;  %709 = vmatpush.msra.mxu3 %v315_v1  ;;  %v308_v8 = vld [vmem:[%s1216_s30 + $0x38] sm:$0xff]  ;;  %v307_v9 = vld [vmem:[%s1216_s30 + $0x30] sm:$0xff]  ;;  %v306_v10 = vld [vmem:[%s1216_s30 + $0x28] sm:$0xff]  ;;  %s577_s5 = sshll.u32 %s574_s29, 4  ;;  %s578_s5 = int_to_ptr.hbm [resolvable:$true] %s577_s5 }
  0x63   : > { %322 = vmatpush.msra.mxu0 %v315_v1  ;;  %707 = vmatpush.msra.mxu1 %v315_v1  ;;  %v305_v11 = vld [vmem:[%s1216_s30 + $0x20] sm:$0xff]  ;;  %v304_v12 = vld [vmem:[%s1216_s30 + $0x18] sm:$0xff]  ;;  %v303_v13 = vld [vmem:[%s1216_s30 + $0x10] sm:$0xff] }
  0x64   : > { %711 = vmatpush.msra.mxu2 %v314_v2  ;;  %712 = vmatpush.msra.mxu3 %v314_v2  ;;  %v302_v14 = vld [vmem:[%s1216_s30 + $0x8] sm:$0xff]  ;;  %v301_v15 = vld [vmem:[%s1216_s30] sm:$0xff]  ;;  %v287_v24 = vld [vmem:[%s1209_s18 + $0x90] sm:$0xff]  ;;  %s929_s30 = scalar_lea.hbm %s1399_s4, 512 }
  0x65   : > { %p264_p6 = scmp.lt.s32.totalorder %s263_s11, 1  ;;  %323 = vmatpush.msra.mxu0 %v314_v2  ;;  %710 = vmatpush.msra.mxu1 %v314_v2  ;;  %v285_v16 = vld [vmem:[%s1209_s18 + $0x80] sm:$0xff]  ;;  %v286_v20 = vld [vmem:[%s1209_s18 + $0x88] sm:$0xff]  ;;  %v295_v25 = vld [vmem:[%s1209_s18 + $0xd0] sm:$0xff] }
  0x66   : > { %714 = vmatpush.msra.mxu2 %v313_v3  ;;  %715 = vmatpush.msra.mxu3 %v313_v3  ;;  %v293_v17 = vld [vmem:[%s1209_s18 + $0xc0] sm:$0xff]  ;;  %v294_v21 = vld [vmem:[%s1209_s18 + $0xc8] sm:$0xff]  ;;  %v271_v26 = vld [vmem:[%s1209_s18 + $0x10] sm:$0xff] }
  0x67   : > { %s1439_s11 = smov (!%p264_p6, %s263_s11), 1  ;;  %324 = vmatpush.msra.mxu0 %v313_v3  ;;  %713 = vmatpush.msra.mxu1 %v313_v3  ;;  %v269_v18 = vld [vmem:[%s1209_s18] sm:$0xff]  ;;  %v270_v22 = vld [vmem:[%s1209_s18 + $0x8] sm:$0xff]  ;;  %v279_v27 = vld [vmem:[%s1209_s18 + $0x50] sm:$0xff] }
  0x68   : > { %s266_s17 = scalar_lea.vmem %s1398_s3, %s1439_s11  ;;  %717 = vmatpush.msra.mxu2 %v312_v4  ;;  %718 = vmatpush.msra.mxu3 %v312_v4  ;;  %v277_v19 = vld [vmem:[%s1209_s18 + $0x40] sm:$0xff]  ;;  %v278_v23 = vld [vmem:[%s1209_s18 + $0x48] sm:$0xff]  ;;  %v288_v28 = vld [vmem:[%s1209_s18 + $0x98] sm:$0xff] }
  0x69   : > { %325 = vmatpush.msra.mxu0 %v312_v4  ;;  %716 = vmatpush.msra.mxu1 %v312_v4  ;;  %v296_v29 = vld [vmem:[%s1209_s18 + $0xd8] sm:$0xff]  ;;  %v289_v32 = vld [vmem:[%s1209_s18 + $0xa0] sm:$0xff]  ;;  %v290_v36 = vld [vmem:[%s1209_s18 + $0xa8] sm:$0xff] }
  0x6a   : > { %720 = vmatpush.msra.mxu2 %v311_v5  ;;  %721 = vmatpush.msra.mxu3 %v311_v5  ;;  %v272_v30 = vld [vmem:[%s1209_s18 + $0x18] sm:$0xff]  ;;  %v297_v33 = vld [vmem:[%s1209_s18 + $0xe0] sm:$0xff]  ;;  %v298_v37 = vld [vmem:[%s1209_s18 + $0xe8] sm:$0xff] }
  0x6b   : > { %326 = vmatpush.msra.mxu0 %v311_v5  ;;  %719 = vmatpush.msra.mxu1 %v311_v5  ;;  %v280_v31 = vld [vmem:[%s1209_s18 + $0x58] sm:$0xff]  ;;  %v273_v34 = vld [vmem:[%s1209_s18 + $0x20] sm:$0xff]  ;;  %v274_v38 = vld [vmem:[%s1209_s18 + $0x28] sm:$0xff] }
  0x6c   : > { %723 = vmatpush.msra.mxu2 %v310_v6  ;;  %724 = vmatpush.msra.mxu3 %v310_v6  ;;  %v281_v35 = vld [vmem:[%s1209_s18 + $0x60] sm:$0xff]  ;;  %v282_v39 = vld [vmem:[%s1209_s18 + $0x68] sm:$0xff]  ;;  %v291_v40 = vld [vmem:[%s1209_s18 + $0xb0] sm:$0xff] }
  0x6d   : > { %327 = vmatpush.msra.mxu0 %v310_v6  ;;  %722 = vmatpush.msra.mxu1 %v310_v6  ;;  %v299_v41 = vld [vmem:[%s1209_s18 + $0xf0] sm:$0xff]  ;;  %v292_v44 = vld [vmem:[%s1209_s18 + $0xb8] sm:$0xff]  ;;  %v1282_v48 = vld [vmem:[%s266_s17] ss:$0 sm:$0xff] }
  0x6e   : > { %726 = vmatpush.msra.mxu2 %v309_v7  ;;  %727 = vmatpush.msra.mxu3 %v309_v7  ;;  %v275_v42 = vld [vmem:[%s1209_s18 + $0x30] sm:$0xff]  ;;  %v300_v45 = vld [vmem:[%s1209_s18 + $0xf8] sm:$0xff] }
  0x6f   : > { %328 = vmatpush.msra.mxu0 %v309_v7  ;;  %725 = vmatpush.msra.mxu1 %v309_v7  ;;  %v283_v43 = vld [vmem:[%s1209_s18 + $0x70] sm:$0xff]  ;;  %v276_v46 = vld [vmem:[%s1209_s18 + $0x38] sm:$0xff] }
  0x70   : > { %729 = vmatpush.msra.mxu2 %v308_v8  ;;  %730 = vmatpush.msra.mxu3 %v308_v8  ;;  %v284_v47 = vld [vmem:[%s1209_s18 + $0x78] sm:$0xff]  ;;  %s923_s18 = sshra.s32 %s578_s5, 4  ;;  %s924_s18 = int_to_ptr.hbm [resolvable:$true] %s923_s18 }
  0x71   : > { %329 = vmatpush.msra.mxu0 %v308_v8  ;;  %728 = vmatpush.msra.mxu1 %v308_v8  ;;  %s925_s1 = scalar_lea.hbm %s924_s18, 256  ;;  %p930_p11 = scmp.lt.s32.totalorder %s924_s18, %s1399_s4 }
  0x72   : > { %732 = vmatpush.msra.mxu2 %v307_v9  ;;  %733 = vmatpush.msra.mxu3 %v307_v9  ;;  %p926_p9 = scmp.ne.s32.totalorder %s924_s18, %s925_s1  ;;  %p931_p1 = scmp.lt.s32.totalorder %s929_s30, %s925_s1 }
  0x73   : > { %330 = vmatpush.msra.mxu0 %v307_v9  ;;  %731 = vmatpush.msra.mxu1 %v307_v9 }
  0x74   : > { %735 = vmatpush.msra.mxu2 %v306_v10  ;;  %736 = vmatpush.msra.mxu3 %v306_v10  ;;  %p927_p3 = pnand %p926_p9, %p1111_p10  ;;  %p932_p7 = por %p931_p1, %p930_p11 }
  0x75   : > { %331 = vmatpush.msra.mxu0 %v306_v10  ;;  %734 = vmatpush.msra.mxu1 %v306_v10 }
  0x76   : > { %738 = vmatpush.msra.mxu2 %v305_v11  ;;  %739 = vmatpush.msra.mxu3 %v305_v11  ;;  %p928_p5 = pneg %p927_p3 }
  0x77   : > { %332 = vmatpush.msra.mxu0 %v305_v11  ;;  %737 = vmatpush.msra.mxu1 %v305_v11 }
  0x78   : > { %741 = vmatpush.msra.mxu2 %v304_v12  ;;  %742 = vmatpush.msra.mxu3 %v304_v12  ;;  %p933_p13 = pnand %p932_p7, %p928_p5 }
  0x79   : > { %333 = vmatpush.msra.mxu0 %v304_v12  ;;  %740 = vmatpush.msra.mxu1 %v304_v12 }
  0x7a   : > { %744 = vmatpush.msra.mxu2 %v303_v13  ;;  %745 = vmatpush.msra.mxu3 %v303_v13 }
  0x7b   : > { %334 = vmatpush.msra.mxu0 %v303_v13  ;;  %743 = vmatpush.msra.mxu1 %v303_v13 }
  0x7c   : > { %747 = vmatpush.msra.mxu2 %v302_v14  ;;  %748 = vmatpush.msra.mxu3 %v302_v14 }
  0x7d   : > { %335 = vmatpush.msra.mxu0 %v302_v14  ;;  %746 = vmatpush.msra.mxu1 %v302_v14 }
  0x7e   : > { %750 = vmatpush.msra.mxu2 %v301_v15  ;;  %751 = vmatpush.msra.mxu3 %v301_v15 }
  0x7f   : > { %385 = vmatmul.f32.vlgmr.msra.gmra.mxu2 %v285_v16  ;;  %409 = vmatmul.f32.vlgmr.msra.gmra.mxu3 %v293_v17 }
  0x80   : > { %336 = vmatpush.msra.mxu0 %v301_v15  ;;  %749 = vmatpush.msra.mxu1 %v301_v15 }
  0x81   : > { %337 = vmatmul.f32.vlgmr.msra.gmra.mxu0 %v269_v18  ;;  %361 = vmatmul.f32.vlgmr.msra.gmra.mxu1 %v277_v19 }
  0x87   : > { %388 = vmatmul.f32.gmra.mxu2 %v286_v20  ;;  %412 = vmatmul.f32.gmra.mxu3 %v294_v21 }
  0x89   : > { %340 = vmatmul.f32.gmra.mxu0 %v270_v22  ;;  %364 = vmatmul.f32.gmra.mxu1 %v278_v23 }
  0x8f   : > { %391 = vmatmul.f32.gmra.mxu2 %v287_v24  ;;  %415 = vmatmul.f32.gmra.mxu3 %v295_v25 }
  0x91   : > { %343 = vmatmul.f32.gmra.mxu0 %v271_v26  ;;  %367 = vmatmul.f32.gmra.mxu1 %v279_v27 }
  0x97   : > { %394 = vmatmul.f32.gmra.mxu2 %v288_v28  ;;  %418 = vmatmul.f32.gmra.mxu3 %v296_v29 }
  0x99   : > { %346 = vmatmul.f32.gmra.mxu0 %v272_v30  ;;  %370 = vmatmul.f32.gmra.mxu1 %v280_v31 }
  0x9f   : > { %397 = vmatmul.f32.gmra.mxu2 %v289_v32  ;;  %421 = vmatmul.f32.gmra.mxu3 %v297_v33 }
  0xa1   : > { %349 = vmatmul.f32.gmra.mxu0 %v273_v34  ;;  %373 = vmatmul.f32.gmra.mxu1 %v281_v35 }
  0xa7   : > { %400 = vmatmul.f32.gmra.mxu2 %v290_v36  ;;  %424 = vmatmul.f32.gmra.mxu3 %v298_v37 }
  0xa9   : > { %352 = vmatmul.f32.gmra.mxu0 %v274_v38  ;;  %376 = vmatmul.f32.gmra.mxu1 %v282_v39 }
  0xaf   : > { %403 = vmatmul.f32.gmra.mxu2 %v291_v40  ;;  %427 = vmatmul.f32.gmra.mxu3 %v299_v41 }
  0xb1   : > { %355 = vmatmul.f32.gmra.mxu0 %v275_v42  ;;  %379 = vmatmul.f32.gmra.mxu1 %v283_v43 }
  0xb7   : > { %406 = vmatmul.f32.gmra.mxu2 %v292_v44  ;;  %430 = vmatmul.f32.gmra.mxu3 %v300_v45 }
  0xb9   : > { %358 = vmatmul.f32.gmra.mxu0 %v276_v46  ;;  %382 = vmatmul.f32.gmra.mxu1 %v284_v47 }
  0xfe   : > { %v338_v49 = vpop.f32.mrf.mxu0  ;;  %v362_v50 = vpop.f32.mrf.mxu1 }
  0xff   : > { %v339_v51 = vadd.f32 %v1282_v48, %v338_v49  ;;  %v363_v52 = vadd.f32 %v1282_v48, %v362_v50 }
 0x101   : > { %vm434_vm0 = vcmp.ge.f32.partialorder %v339_v51, 0.0  ;;  %v466_v53 = vmul.f32 0.3, %v339_v51  ;;  %vm442_vm1 = vcmp.ge.f32.partialorder %v363_v52, 0.0  ;;  %v474_v54 = vmul.f32 0.3, %v363_v52 }
 0x102   : > { %v386_v55 = vpop.f32.mrf.mxu2  ;;  %v410_v56 = vpop.f32.mrf.mxu3 }
 0x103   : > { %v498_v57 = vsel %vm434_vm0, %v339_v51, %v466_v53  ;;  %v506_v58 = vsel %vm442_vm1, %v363_v52, %v474_v54  ;;  %v387_v59 = vadd.f32 %v1282_v48, %v386_v55  ;;  %v411_v60 = vadd.f32 %v1282_v48, %v410_v56 }
 0x104   : > { %530 = vst [vmem:[%s1290_s19] sm:$0xff] %v498_v57 }
 0x105   : > { %538 = vst [vmem:[%s1290_s19 + $0x40] sm:$0xff] %v506_v58  ;;  %vm450_vm2 = vcmp.ge.f32.partialorder %v387_v59, 0.0  ;;  %v482_v61 = vmul.f32 0.3, %v387_v59  ;;  %vm458_vm3 = vcmp.ge.f32.partialorder %v411_v60, 0.0 }
 0x106   : > { %v490_v62 = vmul.f32 0.3, %v411_v60  ;;  %v341_v63 = vpop.f32.mrf.mxu0  ;;  %v365_v0 = vpop.f32.mrf.mxu1 }
 0x107   : > { %v514_v1 = vsel %vm450_vm2, %v387_v59, %v482_v61  ;;  %v342_v2 = vadd.f32 %v1282_v48, %v341_v63  ;;  %v366_v3 = vadd.f32 %v1282_v48, %v365_v0 }
 0x108   : > { %546 = vst [vmem:[%s1290_s19 + $0x80] sm:$0xff] %v514_v1  ;;  %v522_v4 = vsel %vm458_vm3, %v411_v60, %v490_v62 }
 0x109   : > { %554 = vst [vmem:[%s1290_s19 + $0xc0] sm:$0xff] %v522_v4  ;;  %vm435_vm4 = vcmp.ge.f32.partialorder %v342_v2, 0.0  ;;  %v467_v5 = vmul.f32 0.3, %v342_v2  ;;  %vm443_vm5 = vcmp.ge.f32.partialorder %v366_v3, 0.0 }
 0x10a   : > { %v475_v6 = vmul.f32 0.3, %v366_v3  ;;  %v389_v7 = vpop.f32.mrf.mxu2  ;;  %v413_v8 = vpop.f32.mrf.mxu3 }
 0x10b   : > { %v499_v9 = vsel %vm435_vm4, %v342_v2, %v467_v5  ;;  %v390_v10 = vadd.f32 %v1282_v48, %v389_v7  ;;  %v414_v11 = vadd.f32 %v1282_v48, %v413_v8 }
 0x10c   : > { %531 = vst [vmem:[%s1290_s19 + $0x8] sm:$0xff] %v499_v9  ;;  %v507_v12 = vsel %vm443_vm5, %v366_v3, %v475_v6 }
 0x10d   : > { %539 = vst [vmem:[%s1290_s19 + $0x48] sm:$0xff] %v507_v12  ;;  %vm451_vm6 = vcmp.ge.f32.partialorder %v390_v10, 0.0  ;;  %v483_v13 = vmul.f32 0.3, %v390_v10  ;;  %vm459_vm7 = vcmp.ge.f32.partialorder %v414_v11, 0.0 }
 0x10e   : > { %v491_v14 = vmul.f32 0.3, %v414_v11  ;;  %v344_v15 = vpop.f32.mrf.mxu0  ;;  %v368_v16 = vpop.f32.mrf.mxu1 }
 0x10f   : > { %v515_v17 = vsel %vm451_vm6, %v390_v10, %v483_v13  ;;  %v345_v18 = vadd.f32 %v1282_v48, %v344_v15  ;;  %v369_v19 = vadd.f32 %v1282_v48, %v368_v16 }
 0x110   : > { %547 = vst [vmem:[%s1290_s19 + $0x88] sm:$0xff] %v515_v17  ;;  %v523_v20 = vsel %vm459_vm7, %v414_v11, %v491_v14 }
 0x111   : > { %555 = vst [vmem:[%s1290_s19 + $0xc8] sm:$0xff] %v523_v20  ;;  %vm436_vm8 = vcmp.ge.f32.partialorder %v345_v18, 0.0  ;;  %v468_v21 = vmul.f32 0.3, %v345_v18  ;;  %vm444_vm9 = vcmp.ge.f32.partialorder %v369_v19, 0.0 }
 0x112   : > { %v476_v22 = vmul.f32 0.3, %v369_v19  ;;  %v392_v23 = vpop.f32.mrf.mxu2  ;;  %v416_v24 = vpop.f32.mrf.mxu3 }
 0x113   : > { %v500_v25 = vsel %vm436_vm8, %v345_v18, %v468_v21  ;;  %v393_v26 = vadd.f32 %v1282_v48, %v392_v23  ;;  %v417_v27 = vadd.f32 %v1282_v48, %v416_v24 }
 0x114   : > { %532 = vst [vmem:[%s1290_s19 + $0x10] sm:$0xff] %v500_v25  ;;  %v508_v28 = vsel %vm444_vm9, %v369_v19, %v476_v22 }
 0x115   : > { %540 = vst [vmem:[%s1290_s19 + $0x50] sm:$0xff] %v508_v28  ;;  %vm452_vm10 = vcmp.ge.f32.partialorder %v393_v26, 0.0  ;;  %v484_v29 = vmul.f32 0.3, %v393_v26  ;;  %vm460_vm11 = vcmp.ge.f32.partialorder %v417_v27, 0.0 }
 0x116   : > { %v492_v30 = vmul.f32 0.3, %v417_v27  ;;  %v347_v31 = vpop.f32.mrf.mxu0  ;;  %v371_v32 = vpop.f32.mrf.mxu1 }
 0x117   : > { %v516_v33 = vsel %vm452_vm10, %v393_v26, %v484_v29  ;;  %v348_v34 = vadd.f32 %v1282_v48, %v347_v31  ;;  %v372_v35 = vadd.f32 %v1282_v48, %v371_v32 }
 0x118   : > { %548 = vst [vmem:[%s1290_s19 + $0x90] sm:$0xff] %v516_v33  ;;  %v524_v36 = vsel %vm460_vm11, %v417_v27, %v492_v30 }
 0x119   : > { %556 = vst [vmem:[%s1290_s19 + $0xd0] sm:$0xff] %v524_v36  ;;  %vm437_vm12 = vcmp.ge.f32.partialorder %v348_v34, 0.0  ;;  %v469_v37 = vmul.f32 0.3, %v348_v34  ;;  %vm445_vm13 = vcmp.ge.f32.partialorder %v372_v35, 0.0 }
 0x11a   : > { %v477_v38 = vmul.f32 0.3, %v372_v35  ;;  %v395_v39 = vpop.f32.mrf.mxu2  ;;  %v419_v40 = vpop.f32.mrf.mxu3 }
 0x11b   : > { %v501_v41 = vsel %vm437_vm12, %v348_v34, %v469_v37  ;;  %v396_v42 = vadd.f32 %v1282_v48, %v395_v39  ;;  %v420_v43 = vadd.f32 %v1282_v48, %v419_v40 }
 0x11c   : > { %533 = vst [vmem:[%s1290_s19 + $0x18] sm:$0xff] %v501_v41  ;;  %v509_v44 = vsel %vm445_vm13, %v372_v35, %v477_v38 }
 0x11d   : > { %541 = vst [vmem:[%s1290_s19 + $0x58] sm:$0xff] %v509_v44  ;;  %vm453_vm14 = vcmp.ge.f32.partialorder %v396_v42, 0.0  ;;  %v485_v45 = vmul.f32 0.3, %v396_v42  ;;  %vm461_vm15 = vcmp.ge.f32.partialorder %v420_v43, 0.0 }
 0x11e   : > { %v493_v46 = vmul.f32 0.3, %v420_v43  ;;  %v350_v47 = vpop.f32.mrf.mxu0  ;;  %v374_v49 = vpop.f32.mrf.mxu1 }
 0x11f   : > { %v517_v50 = vsel %vm453_vm14, %v396_v42, %v485_v45  ;;  %v351_v51 = vadd.f32 %v1282_v48, %v350_v47  ;;  %v375_v52 = vadd.f32 %v1282_v48, %v374_v49 }
 0x120   : > { %549 = vst [vmem:[%s1290_s19 + $0x98] sm:$0xff] %v517_v50  ;;  %v525_v53 = vsel %vm461_vm15, %v420_v43, %v493_v46 }
 0x121   : > { %557 = vst [vmem:[%s1290_s19 + $0xd8] sm:$0xff] %v525_v53  ;;  %vm438_vm0 = vcmp.ge.f32.partialorder %v351_v51, 0.0  ;;  %v470_v54 = vmul.f32 0.3, %v351_v51  ;;  %vm446_vm1 = vcmp.ge.f32.partialorder %v375_v52, 0.0 }
 0x122   : > { %v478_v55 = vmul.f32 0.3, %v375_v52  ;;  %v398_v56 = vpop.f32.mrf.mxu2  ;;  %v422_v57 = vpop.f32.mrf.mxu3 }
 0x123   : > { %v502_v58 = vsel %vm438_vm0, %v351_v51, %v470_v54  ;;  %v399_v59 = vadd.f32 %v1282_v48, %v398_v56  ;;  %v423_v60 = vadd.f32 %v1282_v48, %v422_v57 }
 0x124   : > { %534 = vst [vmem:[%s1290_s19 + $0x20] sm:$0xff] %v502_v58  ;;  %v510_v61 = vsel %vm446_vm1, %v375_v52, %v478_v55 }
 0x125   : > { %542 = vst [vmem:[%s1290_s19 + $0x60] sm:$0xff] %v510_v61  ;;  %vm454_vm2 = vcmp.ge.f32.partialorder %v399_v59, 0.0  ;;  %v486_v62 = vmul.f32 0.3, %v399_v59  ;;  %vm462_vm3 = vcmp.ge.f32.partialorder %v423_v60, 0.0 }
 0x126   : > { %v494_v63 = vmul.f32 0.3, %v423_v60  ;;  %v353_v0 = vpop.f32.mrf.mxu0  ;;  %v377_v1 = vpop.f32.mrf.mxu1 }
 0x127   : > { %v518_v2 = vsel %vm454_vm2, %v399_v59, %v486_v62  ;;  %v354_v3 = vadd.f32 %v1282_v48, %v353_v0  ;;  %v378_v4 = vadd.f32 %v1282_v48, %v377_v1 }
 0x128   : > { %550 = vst [vmem:[%s1290_s19 + $0xa0] sm:$0xff] %v518_v2  ;;  %v526_v5 = vsel %vm462_vm3, %v423_v60, %v494_v63 }
 0x129   : > { %558 = vst [vmem:[%s1290_s19 + $0xe0] sm:$0xff] %v526_v5  ;;  %vm439_vm4 = vcmp.ge.f32.partialorder %v354_v3, 0.0  ;;  %v471_v6 = vmul.f32 0.3, %v354_v3  ;;  %vm447_vm5 = vcmp.ge.f32.partialorder %v378_v4, 0.0 }
 0x12a   : > { %v479_v7 = vmul.f32 0.3, %v378_v4  ;;  %v401_v8 = vpop.f32.mrf.mxu2  ;;  %v425_v9 = vpop.f32.mrf.mxu3 }
 0x12b   : > { %v503_v10 = vsel %vm439_vm4, %v354_v3, %v471_v6  ;;  %v402_v11 = vadd.f32 %v1282_v48, %v401_v8  ;;  %v426_v12 = vadd.f32 %v1282_v48, %v425_v9 }
 0x12c   : > { %535 = vst [vmem:[%s1290_s19 + $0x28] sm:$0xff] %v503_v10  ;;  %v511_v13 = vsel %vm447_vm5, %v378_v4, %v479_v7 }
 0x12d   : > { %543 = vst [vmem:[%s1290_s19 + $0x68] sm:$0xff] %v511_v13  ;;  %vm455_vm6 = vcmp.ge.f32.partialorder %v402_v11, 0.0  ;;  %v487_v14 = vmul.f32 0.3, %v402_v11  ;;  %vm463_vm7 = vcmp.ge.f32.partialorder %v426_v12, 0.0 }
 0x12e   : > { %v495_v15 = vmul.f32 0.3, %v426_v12  ;;  %v356_v16 = vpop.f32.mrf.mxu0  ;;  %v380_v17 = vpop.f32.mrf.mxu1 }
 0x12f   : > { %v519_v18 = vsel %vm455_vm6, %v402_v11, %v487_v14  ;;  %v357_v19 = vadd.f32 %v1282_v48, %v356_v16  ;;  %v381_v20 = vadd.f32 %v1282_v48, %v380_v17 }
 0x130   : > { %551 = vst [vmem:[%s1290_s19 + $0xa8] sm:$0xff] %v519_v18  ;;  %v527_v21 = vsel %vm463_vm7, %v426_v12, %v495_v15 }
 0x131   : > { %559 = vst [vmem:[%s1290_s19 + $0xe8] sm:$0xff] %v527_v21  ;;  %vm440_vm8 = vcmp.ge.f32.partialorder %v357_v19, 0.0  ;;  %v472_v22 = vmul.f32 0.3, %v357_v19  ;;  %vm448_vm9 = vcmp.ge.f32.partialorder %v381_v20, 0.0 }
 0x132   : > { %v480_v23 = vmul.f32 0.3, %v381_v20  ;;  %v404_v24 = vpop.f32.mrf.mxu2  ;;  %v428_v25 = vpop.f32.mrf.mxu3 }
 0x133   : > { %v504_v26 = vsel %vm440_vm8, %v357_v19, %v472_v22  ;;  %v405_v27 = vadd.f32 %v1282_v48, %v404_v24  ;;  %v429_v28 = vadd.f32 %v1282_v48, %v428_v25 }
 0x134   : > { %536 = vst [vmem:[%s1290_s19 + $0x30] sm:$0xff] %v504_v26  ;;  %v512_v29 = vsel %vm448_vm9, %v381_v20, %v480_v23 }
 0x135   : > { %544 = vst [vmem:[%s1290_s19 + $0x70] sm:$0xff] %v512_v29  ;;  %vm456_vm10 = vcmp.ge.f32.partialorder %v405_v27, 0.0  ;;  %v488_v30 = vmul.f32 0.3, %v405_v27  ;;  %vm464_vm11 = vcmp.ge.f32.partialorder %v429_v28, 0.0 }
 0x136   : > { %v496_v31 = vmul.f32 0.3, %v429_v28  ;;  %v359_v32 = vpop.f32.mrf.mxu0  ;;  %v383_v33 = vpop.f32.mrf.mxu1 }
 0x137   : > { %v520_v34 = vsel %vm456_vm10, %v405_v27, %v488_v30  ;;  %v360_v35 = vadd.f32 %v1282_v48, %v359_v32  ;;  %v384_v36 = vadd.f32 %v1282_v48, %v383_v33 }
 0x138   : > { %552 = vst [vmem:[%s1290_s19 + $0xb0] sm:$0xff] %v520_v34  ;;  %v528_v37 = vsel %vm464_vm11, %v429_v28, %v496_v31 }
 0x139   : > { %560 = vst [vmem:[%s1290_s19 + $0xf0] sm:$0xff] %v528_v37  ;;  %vm441_vm12 = vcmp.ge.f32.partialorder %v360_v35, 0.0  ;;  %v473_v38 = vmul.f32 0.3, %v360_v35  ;;  %vm449_vm13 = vcmp.ge.f32.partialorder %v384_v36, 0.0 }
 0x13a   : > { %v481_v39 = vmul.f32 0.3, %v384_v36  ;;  %v407_v40 = vpop.f32.mrf.mxu2  ;;  %v431_v41 = vpop.f32.mrf.mxu3 }
 0x13b   : > { %v505_v42 = vsel %vm441_vm12, %v360_v35, %v473_v38  ;;  %v408_v43 = vadd.f32 %v1282_v48, %v407_v40  ;;  %v432_v44 = vadd.f32 %v1282_v48, %v431_v41 }
 0x13c   : > { %537 = vst [vmem:[%s1290_s19 + $0x38] sm:$0xff] %v505_v42  ;;  %v513_v45 = vsel %vm449_vm13, %v384_v36, %v481_v39 }
 0x13d   : > { %545 = vst [vmem:[%s1290_s19 + $0x78] sm:$0xff] %v513_v45  ;;  %vm457_vm14 = vcmp.ge.f32.partialorder %v408_v43, 0.0  ;;  %v489_v46 = vmul.f32 0.3, %v408_v43  ;;  %vm465_vm15 = vcmp.ge.f32.partialorder %v432_v44, 0.0 }
 0x13e   : > { %v497_v47 = vmul.f32 0.3, %v432_v44 }
 0x13f   : > { %v521_v49 = vsel %vm457_vm14, %v408_v43, %v489_v46 }
 0x140   : > { %553 = vst [vmem:[%s1290_s19 + $0xb8] sm:$0xff] %v521_v49  ;;  %v529_v50 = vsel %vm465_vm15, %v432_v44, %v497_v47 }
 0x141   : > { %561 = vst [vmem:[%s1290_s19 + $0xf8] sm:$0xff] %v529_v50 }
 0x142   : > { %936 = shalt.err (!%p933_p13)
}
 0x143   : > { %s1010_s7 = smov 128   ;;  %s1011_s26 = smov 8  }
 0x144   : > { %758 = dma.vmem_to_hbm [thread:$0]  (%p1111_p10), %s576_s25, 4096, %s578_s5, %s563_s16, %s1010_s7, %s1010_s7, %s1011_s26  }
 0x145 PF: > { %s592_s17 = sand.u32 1, %s993_s22   ;;  %p1424_p8 = scmp.ge.s32.totalorder %s1005_s24, 2 }
 0x146   : > { %s593_s12 = scalar_lea.sflag [#allocation6], %s592_s17 }
 0x147   : > { %p770_p0 = pnand %p1424_p8, %p1116_p12 }
 0x149   : > { %p771_p4 = pneg %p770_p0 }
 0x14b   : > { %976 = dma.done.wait (%p771_p4), %s593_s12, 4096  }
 0x14c   : > { %978 = vsyncadd (%p771_p4), %s593_s12, 4294963200  ;;  %s1425_s28 = sld [smem:[#allocation18_spill]]  ;;  %p28_p10 = scmp.ge.s32.totalorder %s1080_s27, 4  }
 0x14d   : > { %s1426_s13 = sld [smem:[#allocation16_spill]]  ;;  %s1428_s19 = smov %s985_s20 }
 0x14e   : > { %s1427_s23 = sld [smem:[#allocation17_spill]]  ;;  %s1429_s20 = smov %s989_s21 }
 0x14f   : > { %s1431_s22 = smov %s997_s0  ;;  %s1433_s24 = smov %s1080_s27 }
 0x150   :  { %30 = sbr.rel (!%p28_p10) target bundleno = 15 (0xf), region = 93 }
 0x152   : > { %s1430_s21 = smov %s1425_s28 }
 0x153   : > { %s1432_s0 = smov %s1426_s13 }
 0x155   :  { %599 = vsyncpa [#allocation5], 1 }
 0x156   :  { %601 = vsyncpa [#allocation5 + $0x1], 1 }
 0x157   :  { %602 = vsyncpa [#allocation8], 1 }
 0x158   :  { %604 = vsyncpa [#allocation8 + $0x1], 1 }
 0x159   :  { %605 = vsyncpa [#allocation6], 1 }
 0x15a   :  { %607 = vsyncpa [#allocation6 + $0x1], 1 }

</bundles_post_ra>
